<compile_context>
chip_gen: v6e
topology: v6e:2x2x1
jax: 0.10.0
libtpu: 0.0.40
codegen_flags: <defaults>
</compile_context>

<pallas_src>
import math

import jax
import jax.numpy as jnp
from jax.experimental import pallas as pl
from jax.experimental.pallas import tpu as pltpu


# ----------------------------------------------------------------------------
# Per-generation compute dtype for MXU operands.
# ----------------------------------------------------------------------------
def _round_up(x, m):
    return (x + m - 1) // m * m


def _device_kind():
    try:
        return jax.devices()[0].device_kind.lower()
    except Exception:  # pragma: no cover - defensive
        return ""


_KIND = _device_kind()
# bf16 operands (f32 accumulate) on v6e / v7x; keep f32 on v5e / unknown.
_USE_BF16 = any(tag in _KIND for tag in ("v6", "v7", "7x"))
_COMPUTE_DTYPE = jnp.bfloat16 if _USE_BF16 else jnp.float32


# ----------------------------------------------------------------------------
# Fused classifier MLP kernel: out = tanh(x @ W1 + b1) @ W2 + b2
#   x  : (M_pad, D_pad)  compute dtype          w1 : (D_pad, H_pad) compute dtype
#   b1 : (1, H_pad) f32                          w2 : (H_pad, N_pad) compute dtype
#   b2 : (1, N_pad) f32                          out: (M_pad, N_pad) f32 (lane-dense)
# ----------------------------------------------------------------------------
def _mlp_kernel(x_ref, w1_ref, b1_ref, w2_ref, b2_ref, out_ref):
    h = jnp.dot(x_ref[...], w1_ref[...], preferred_element_type=jnp.float32)  # MXU
    h = jnp.tanh(h + b1_ref[...])                                             # VPU + EUP (f32)
    o = jnp.dot(h.astype(w2_ref.dtype), w2_ref[...],
                preferred_element_type=jnp.float32) + b2_ref[...]             # MXU
    out_ref[...] = o                                                          # unmasked (8,128) f32 store


def make_classifier_mlp(w1, b1, w2, b2):
    """Build a jitted callable x -> tanh(x @ w1 + b1) @ w2 + b2 using one Pallas kernel.

    w1: (input_dim, hidden), b1: (hidden,), w2: (hidden, n_classes), b2: (n_classes,).
    Weights are zero-padded once to (8, 128)-friendly shapes and cast to the
    per-generation MXU compute dtype (one-time host/device cost, not per call).
    """
    input_dim, hidden = w1.shape
    n_classes = w2.shape[1]
    d_pad = _round_up(input_dim, 128)
    h_pad = _round_up(hidden, 128)      # 500 -> 512
    n_pad = _round_up(n_classes, 128)   # 2   -> 128 (lane-dense output slab)

    w1p = jnp.zeros((d_pad, h_pad), jnp.float32).at[:input_dim, :hidden].set(w1)
    b1p = jnp.zeros((1, h_pad), jnp.float32).at[0, :hidden].set(b1)
    w2p = jnp.zeros((h_pad, n_pad), jnp.float32).at[:hidden, :n_classes].set(w2)
    b2p = jnp.zeros((1, n_pad), jnp.float32).at[0, :n_classes].set(b2)
    w1p = w1p.astype(_COMPUTE_DTYPE)
    w2p = w2p.astype(_COMPUTE_DTYPE)

    vmem = pl.BlockSpec(memory_space=pltpu.MemorySpace.VMEM)

    @jax.jit
    def run(x):
        batch = x.shape[0]
        m_pad = _round_up(batch, 8)                      # f32 sublane alignment
        xp = jnp.zeros((m_pad, d_pad), _COMPUTE_DTYPE)
        xp = xp.at[:batch, :input_dim].set(x.astype(_COMPUTE_DTYPE))
        out = pl.pallas_call(
            _mlp_kernel,
            out_shape=jax.ShapeDtypeStruct((m_pad, n_pad), jnp.float32),
            in_specs=[vmem, vmem, vmem, vmem, vmem],     # whole-array blocks, no grid
            out_specs=vmem,
        )(xp, w1p, b1p, w2p, b2p)
        return out[:batch, :n_classes]                   # slice back to logical shape

    return run


# ----------------------------------------------------------------------------
# forward(): everything is a compile-time constant (per perf review) — no kernel.
# ----------------------------------------------------------------------------
# argmax of [[0.9, 0.1]] over dim 1. NOTE: torch.max returns int64 indices; we
# use int32 (JAX x64 disabled).
_PRED_CLASS = jnp.zeros((1,), dtype=jnp.int32)
# CrossEntropyLoss([[0.9, 0.1]], [0]) = logsumexp([0.9, 0.1]) - 0.9
_CE_LOSS = jnp.asarray(math.log(math.exp(0.9) + math.exp(0.1)) - 0.9, dtype=jnp.float32)


def sent_classifier_forward(sentence_vec, target=None):
    """Mirrors SentClassifier.forward exactly (sentence_vec is never used).

    `predicted` is the literal constant [[0.9, 0.1]] and the CE target is [0], so
    predicted_class and the loss are constants; returning precomputed device
    constants avoids the custom-call launch the previous version paid per call.
    """
    del sentence_vec  # forward() never uses it — matches the PyTorch module.
    if target is not None:
        return _PRED_CLASS, _CE_LOSS
    return _PRED_CLASS


# ----------------------------------------------------------------------------
# Deterministic parameter init mimicking nn.Linear (uniform +/- 1/sqrt(fan_in)).
# ----------------------------------------------------------------------------
def init_params(key, input_dim, n_classes, hidden_dim=500):
    k1, k2, k3, k4 = jax.random.split(key, 4)
    s1 = 1.0 / math.sqrt(input_dim)
    s2 = 1.0 / math.sqrt(hidden_dim)
    w1 = jax.random.uniform(k1, (input_dim, hidden_dim), jnp.float32, -s1, s1)
    b1 = jax.random.uniform(k2, (hidden_dim,), jnp.float32, -s1, s1)
    w2 = jax.random.uniform(k3, (hidden_dim, n_classes), jnp.float32, -s2, s2)
    b2 = jax.random.uniform(k4, (n_classes,), jnp.float32, -s2, s2)
    return w1, b1, w2, b2


if __name__ == "__main__":
    key = jax.random.PRNGKey(0)
    batch, input_dim, n_classes = 2, 32, 2

    kx, kp = jax.random.split(key)
    sentence_vec = jax.random.normal(kx, (batch, input_dim), jnp.float32)
    w1, b1, w2, b2 = init_params(kp, input_dim, n_classes)

    # Exercise the classifier MLP kernel (the submodule exists but forward()
    # never calls it, matching the PyTorch reference).
    classifier_mlp = make_classifier_mlp(w1, b1, w2, b2)
    logits = classifier_mlp(sentence_vec)
    jax.block_until_ready(logits)
    assert logits.shape == (batch, n_classes)

    # Reference using the same operand-dtype rounding as the kernel.
    xc = sentence_vec.astype(_COMPUTE_DTYPE).astype(jnp.float32)
    w1c = w1.astype(_COMPUTE_DTYPE).astype(jnp.float32)
    w2c = w2.astype(_COMPUTE_DTYPE).astype(jnp.float32)
    h_ref = jnp.tanh(xc @ w1c + b1)
    ref_logits = h_ref.astype(_COMPUTE_DTYPE).astype(jnp.float32) @ w2c + b2
    tol = 2e-2 if _USE_BF16 else 1e-4
    assert jnp.allclose(logits, ref_logits, atol=tol, rtol=tol), "MLP kernel mismatch"

    # forward() without target -> predicted_class (constant class 0).
    pred_class = sent_classifier_forward(sentence_vec)
    jax.block_until_ready(pred_class)
    assert pred_class.shape == (1,) and int(pred_class[0]) == 0, "argmax must be class 0"

    # forward() with target -> (predicted_class, loss).
    pred_class2, loss = sent_classifier_forward(sentence_vec, target=jnp.array([0]))
    jax.block_until_ready(loss)
    ref_loss = math.log(math.exp(0.9) + math.exp(0.1)) - 0.9
    assert abs(float(loss) - ref_loss) < 1e-6, "cross-entropy loss mismatch"
    assert int(pred_class2[0]) == 0

    print("KERNEL_OK")
</pallas_src>

<mosaic_0001>
module attributes {stable_mosaic.version = 11 : i64} {
  func.func @_mlp_kernel(%arg0: memref<8x128xf32, #tpu.memory_space<vmem>>, %arg1: memref<128x512xf32, #tpu.memory_space<vmem>>, %arg2: memref<1x512xf32, #tpu.memory_space<vmem>>, %arg3: memref<512x128xf32, #tpu.memory_space<vmem>>, %arg4: memref<1x128xf32, #tpu.memory_space<vmem>>, %arg5: memref<8x128xf32, #tpu.memory_space<vmem>>) attributes {dimension_semantics = [], scalar_prefetch = 0 : i64, scratch_operands = 0 : i64, tpu.core_type = #tpu.core_type<tc>} {
    %c0 = arith.constant 0 : index
    %c0_0 = arith.constant 0 : index
    %0 = vector.load %arg0[%c0, %c0_0] : memref<8x128xf32, #tpu.memory_space<vmem>>, vector<8x128xf32>
    %c0_1 = arith.constant 0 : index
    %c0_2 = arith.constant 0 : index
    %1 = vector.load %arg1[%c0_1, %c0_2] : memref<128x512xf32, #tpu.memory_space<vmem>>, vector<128x512xf32>
    %cst = arith.constant dense<0.000000e+00> : vector<8x512xf32>
    %2 = tpu.matmul %0, %1, %cst {dimension_numbers = #tpu.dot_dimension_numbers<[1], [0], [0], [1], [0, 0, 1, 1], [], []>} : vector<8x128xf32>, vector<128x512xf32>, vector<8x512xf32> -> vector<8x512xf32>
    %c0_3 = arith.constant 0 : index
    %c0_4 = arith.constant 0 : index
    %3 = vector.load %arg2[%c0_3, %c0_4] : memref<1x512xf32, #tpu.memory_space<vmem>>, vector<1x512xf32>
    %4 = vector.broadcast %3 : vector<1x512xf32> to vector<8x512xf32>
    %5 = arith.addf %2, %4 : vector<8x512xf32>
    %6 = math.tanh %5 : vector<8x512xf32>
    %c0_5 = arith.constant 0 : index
    %c0_6 = arith.constant 0 : index
    %7 = vector.load %arg3[%c0_5, %c0_6] : memref<512x128xf32, #tpu.memory_space<vmem>>, vector<512x128xf32>
    %cst_7 = arith.constant dense<0.000000e+00> : vector<8x128xf32>
    %8 = tpu.matmul %6, %7, %cst_7 {dimension_numbers = #tpu.dot_dimension_numbers<[1], [0], [0], [1], [0, 0, 1, 1], [], []>} : vector<8x512xf32>, vector<512x128xf32>, vector<8x128xf32> -> vector<8x128xf32>
    %c0_8 = arith.constant 0 : index
    %c0_9 = arith.constant 0 : index
    %9 = vector.load %arg4[%c0_8, %c0_9] : memref<1x128xf32, #tpu.memory_space<vmem>>, vector<1x128xf32>
    %10 = vector.broadcast %9 : vector<1x128xf32> to vector<8x128xf32>
    %11 = arith.addf %8, %10 : vector<8x128xf32>
    %c0_10 = arith.constant 0 : index
    %c0_11 = arith.constant 0 : index
    %12 = vector.load %arg5[%c0_10, %c0_11] : memref<8x128xf32, #tpu.memory_space<vmem>>, vector<8x128xf32>
    tpu.vector_store %arg5[%c0_10, %c0_11], %11 {strides = array<i32>} : memref<8x128xf32, #tpu.memory_space<vmem>>, vector<8x128xf32>,
    return
  }
}

</mosaic_0001>

<bundles_post_ra>
// kernel: run.1
= control target key start
LH: loop header
LB: loop body
LE: loop exit
PB: predicated region body
PF: predicated region fallthrough
CT: control target
= control target key end

     0   :  { %10 = vsyncpa [#allocation3], 0  ;;  %s684_s0 = inlined_call_operand.vmem [shape: f32[8,128], index: 0, kind: input, shape index: {}]   ;;  %s685_s1 = inlined_call_operand.hbm [shape: f32[128,512], index: 1, kind: input, shape index: {}]   ;;  %s686_s2 = inlined_call_operand.vmem [shape: f32[1,512], index: 2, kind: input, shape index: {}]   ;;  %s687_s3 = inlined_call_operand.hbm [shape: f32[512,128], index: 3, kind: input, shape index: {}]   ;;  %s688_s4 = inlined_call_operand.vmem [shape: f32[1,128], index: 4, kind: input, shape index: {}]   ;;  %s689_s5 = inlined_call_operand.vmem [shape: f32[8,128], index: 5, kind: output, shape index: {}]  }
   0x1   :  { %11 = vsyncpa [#allocation5], 0  ;;  %s629_s18 = smov [#allocation2]  }
   0x2   :  { %s19_s19 = sshll.u32 %s629_s18, 4  ;;  %s20_s19 = int_to_ptr.vmem [resolvable:$true] %s19_s19 }
   0x3   :  { %s593_s20 = scalar_lea.vmem %s20_s19, 8192  ;;  %p598_p1 = scmp.lt.s32.totalorder %s20_s19, %s20_s19 }
   0x4   :  { %p594_p0 = scmp.ne.s32.totalorder %s20_s19, %s593_s20  ;;  %p599_p2 = scmp.lt.s32.totalorder %s593_s20, %s593_s20 }
   0x6   :  { %p600_p3 = por %p599_p2, %p598_p1 }
   0x8   :  { %p601_p4 = pnand %p600_p3, %p594_p0 }
   0xa   :  { %604 = shalt.err (!%p601_p4)
}
   0xb   :  { %s630_s21 = smov 512   ;;  %s631_s22 = smov 32  }
   0xc   :  { %25 = dma.hbm_to_vmem [thread:$0]  %s685_s1, 8192, %s20_s19, [#allocation3], %s630_s21, %s630_s21, %s631_s22  }
   0xd   :  { %s632_s25 = smov [#allocation4]  }
   0xe   :  { %s33_s26 = sshll.u32 %s632_s25, 4  ;;  %s34_s26 = int_to_ptr.vmem [resolvable:$true] %s33_s26 }
   0xf   :  { %s613_s27 = scalar_lea.vmem %s34_s26, 8192  ;;  %p618_p6 = scmp.lt.s32.totalorder %s34_s26, %s34_s26 }
  0x10   :  { %p614_p5 = scmp.ne.s32.totalorder %s34_s26, %s613_s27  ;;  %p619_p7 = scmp.lt.s32.totalorder %s613_s27, %s613_s27 }
  0x12   :  { %p620_p8 = por %p619_p7, %p618_p6 }
  0x14   :  { %p621_p9 = pnand %p620_p8, %p614_p5 }
  0x16   :  { %624 = shalt.err (!%p621_p9)
}
  0x17   :  { %s633_s28 = smov 128   ;;  %s634_s29 = smov 8  }
  0x18   :  { %39 = dma.hbm_to_vmem [thread:$0]  %s687_s3, 8192, %s34_s26, [#allocation5], %s633_s28, %s633_s28, %s634_s29  }
  0x19   :  { %625 = dma.done.wait [#allocation3], 8192  }
  0x1a   :  { %626 = vsyncadd [#allocation3], 4294959104 }
  0x1b   :  { %627 = dma.done.wait [#allocation5], 8192  }
  0x1c   :  { %628 = vsyncadd [#allocation5], 4294959104  ;;  %v635_v0 = vmov 0.0   ;;  %v110_v1 = vld [vmem:[#allocation2 + $0x1e8] sm:$0xff]  ;;  %v112_v2 = vld [vmem:[#allocation2 + $0x1f8] sm:$0xff] }
  0x1d   :  { %199 = vmatprep.mubr.f32.mxu0 %v635_v0  ;;  %270 = vmatprep.mubr.f32.mxu1 %v635_v0  ;;  %v109_v3 = vld [vmem:[#allocation2 + $0x1e0] sm:$0xff]  ;;  %v111_v4 = vld [vmem:[#allocation2 + $0x1f0] sm:$0xff]  ;;  %v106_v5 = vld [vmem:[#allocation2 + $0x1c8] sm:$0xff] }
  0x1e   :  { %135 = vmatprep.subr.mxu0 %v110_v1  ;;  %206 = vmatprep.subr.mxu1 %v112_v2  ;;  %v108_v6 = vld [vmem:[#allocation2 + $0x1d8] sm:$0xff]  ;;  %v105_v7 = vld [vmem:[#allocation2 + $0x1c0] sm:$0xff]  ;;  %v107_v8 = vld [vmem:[#allocation2 + $0x1d0] sm:$0xff] }
  0x1f   :  { %136 = vmatpush1.msra.mxu0 %v109_v3  ;;  %207 = vmatpush1.msra.mxu1 %v111_v4  ;;  %v102_v9 = vld [vmem:[#allocation2 + $0x1a8] sm:$0xff]  ;;  %v104_v10 = vld [vmem:[#allocation2 + $0x1b8] sm:$0xff]  ;;  %v101_v11 = vld [vmem:[#allocation2 + $0x1a0] sm:$0xff] }
  0x20   :  { %137 = vmatprep.subr.mxu0 %v106_v5  ;;  %208 = vmatprep.subr.mxu1 %v108_v6  ;;  %v103_v12 = vld [vmem:[#allocation2 + $0x1b0] sm:$0xff]  ;;  %v98_v13 = vld [vmem:[#allocation2 + $0x188] sm:$0xff]  ;;  %v100_v14 = vld [vmem:[#allocation2 + $0x198] sm:$0xff] }
  0x21   :  { %138 = vmatpush1.msra.mxu0 %v105_v7  ;;  %209 = vmatpush1.msra.mxu1 %v107_v8  ;;  %v97_v15 = vld [vmem:[#allocation2 + $0x180] sm:$0xff]  ;;  %v99_v16 = vld [vmem:[#allocation2 + $0x190] sm:$0xff]  ;;  %v94_v17 = vld [vmem:[#allocation2 + $0x168] sm:$0xff] }
  0x22   :  { %139 = vmatprep.subr.mxu0 %v102_v9  ;;  %210 = vmatprep.subr.mxu1 %v104_v10  ;;  %v96_v18 = vld [vmem:[#allocation2 + $0x178] sm:$0xff]  ;;  %v93_v19 = vld [vmem:[#allocation2 + $0x160] sm:$0xff]  ;;  %v95_v20 = vld [vmem:[#allocation2 + $0x170] sm:$0xff] }
  0x23   :  { %140 = vmatpush1.msra.mxu0 %v101_v11  ;;  %211 = vmatpush1.msra.mxu1 %v103_v12  ;;  %v90_v21 = vld [vmem:[#allocation2 + $0x148] sm:$0xff]  ;;  %v92_v22 = vld [vmem:[#allocation2 + $0x158] sm:$0xff]  ;;  %v89_v23 = vld [vmem:[#allocation2 + $0x140] sm:$0xff] }
  0x24   :  { %141 = vmatprep.subr.mxu0 %v98_v13  ;;  %212 = vmatprep.subr.mxu1 %v100_v14  ;;  %v91_v24 = vld [vmem:[#allocation2 + $0x150] sm:$0xff]  ;;  %v86_v25 = vld [vmem:[#allocation2 + $0x128] sm:$0xff]  ;;  %v88_v26 = vld [vmem:[#allocation2 + $0x138] sm:$0xff] }
  0x25   :  { %142 = vmatpush1.msra.mxu0 %v97_v15  ;;  %213 = vmatpush1.msra.mxu1 %v99_v16  ;;  %v85_v27 = vld [vmem:[#allocation2 + $0x120] sm:$0xff]  ;;  %v87_v28 = vld [vmem:[#allocation2 + $0x130] sm:$0xff]  ;;  %v82_v29 = vld [vmem:[#allocation2 + $0x108] sm:$0xff] }
  0x26   :  { %143 = vmatprep.subr.mxu0 %v94_v17  ;;  %214 = vmatprep.subr.mxu1 %v96_v18  ;;  %v84_v30 = vld [vmem:[#allocation2 + $0x118] sm:$0xff]  ;;  %v81_v31 = vld [vmem:[#allocation2 + $0x100] sm:$0xff]  ;;  %v83_v32 = vld [vmem:[#allocation2 + $0x110] sm:$0xff] }
  0x27   :  { %144 = vmatpush1.msra.mxu0 %v93_v19  ;;  %215 = vmatpush1.msra.mxu1 %v95_v20  ;;  %v78_v33 = vld [vmem:[#allocation2 + $0xe8] sm:$0xff]  ;;  %v80_v34 = vld [vmem:[#allocation2 + $0xf8] sm:$0xff]  ;;  %v77_v35 = vld [vmem:[#allocation2 + $0xe0] sm:$0xff] }
  0x28   :  { %145 = vmatprep.subr.mxu0 %v90_v21  ;;  %216 = vmatprep.subr.mxu1 %v92_v22  ;;  %v79_v36 = vld [vmem:[#allocation2 + $0xf0] sm:$0xff]  ;;  %v74_v37 = vld [vmem:[#allocation2 + $0xc8] sm:$0xff]  ;;  %v76_v38 = vld [vmem:[#allocation2 + $0xd8] sm:$0xff] }
  0x29   :  { %146 = vmatpush1.msra.mxu0 %v89_v23  ;;  %217 = vmatpush1.msra.mxu1 %v91_v24  ;;  %v73_v39 = vld [vmem:[#allocation2 + $0xc0] sm:$0xff]  ;;  %v75_v40 = vld [vmem:[#allocation2 + $0xd0] sm:$0xff]  ;;  %v70_v41 = vld [vmem:[#allocation2 + $0xa8] sm:$0xff] }
  0x2a   :  { %147 = vmatprep.subr.mxu0 %v86_v25  ;;  %218 = vmatprep.subr.mxu1 %v88_v26  ;;  %v72_v42 = vld [vmem:[#allocation2 + $0xb8] sm:$0xff]  ;;  %v69_v43 = vld [vmem:[#allocation2 + $0xa0] sm:$0xff]  ;;  %v71_v44 = vld [vmem:[#allocation2 + $0xb0] sm:$0xff] }
  0x2b   :  { %148 = vmatpush1.msra.mxu0 %v85_v27  ;;  %219 = vmatpush1.msra.mxu1 %v87_v28  ;;  %v66_v45 = vld [vmem:[#allocation2 + $0x88] sm:$0xff]  ;;  %v68_v46 = vld [vmem:[#allocation2 + $0x98] sm:$0xff]  ;;  %v65_v47 = vld [vmem:[#allocation2 + $0x80] sm:$0xff] }
  0x2c   :  { %149 = vmatprep.subr.mxu0 %v82_v29  ;;  %220 = vmatprep.subr.mxu1 %v84_v30  ;;  %v67_v48 = vld [vmem:[#allocation2 + $0x90] sm:$0xff]  ;;  %v62_v49 = vld [vmem:[#allocation2 + $0x68] sm:$0xff]  ;;  %v64_v50 = vld [vmem:[#allocation2 + $0x78] sm:$0xff] }
  0x2d   :  { %150 = vmatpush1.msra.mxu0 %v81_v31  ;;  %221 = vmatpush1.msra.mxu1 %v83_v32  ;;  %v61_v51 = vld [vmem:[#allocation2 + $0x60] sm:$0xff]  ;;  %v63_v52 = vld [vmem:[#allocation2 + $0x70] sm:$0xff]  ;;  %v58_v53 = vld [vmem:[#allocation2 + $0x48] sm:$0xff] }
  0x2e   :  { %151 = vmatprep.subr.mxu0 %v78_v33  ;;  %222 = vmatprep.subr.mxu1 %v80_v34  ;;  %v60_v54 = vld [vmem:[#allocation2 + $0x58] sm:$0xff]  ;;  %v57_v55 = vld [vmem:[#allocation2 + $0x40] sm:$0xff]  ;;  %v59_v56 = vld [vmem:[#allocation2 + $0x50] sm:$0xff] }
  0x2f   :  { %152 = vmatpush1.msra.mxu0 %v77_v35  ;;  %223 = vmatpush1.msra.mxu1 %v79_v36  ;;  %v54_v57 = vld [vmem:[#allocation2 + $0x28] sm:$0xff]  ;;  %v56_v58 = vld [vmem:[#allocation2 + $0x38] sm:$0xff]  ;;  %v53_v59 = vld [vmem:[#allocation2 + $0x20] sm:$0xff] }
  0x30   :  { %153 = vmatprep.subr.mxu0 %v74_v37  ;;  %224 = vmatprep.subr.mxu1 %v76_v38  ;;  %v55_v60 = vld [vmem:[#allocation2 + $0x30] sm:$0xff]  ;;  %v50_v61 = vld [vmem:[#allocation2 + $0x8] sm:$0xff]  ;;  %v52_v62 = vld [vmem:[#allocation2 + $0x18] sm:$0xff] }
  0x31   :  { %154 = vmatpush1.msra.mxu0 %v73_v39  ;;  %225 = vmatpush1.msra.mxu1 %v75_v40  ;;  %v49_v63 = vld [vmem:[#allocation2] sm:$0xff]  ;;  %v51_v0 = vld [vmem:[#allocation2 + $0x10] sm:$0xff]  ;;  %v312_v2 = vld [vmem:[#allocation4 + $0xf8] sm:$0xff] }
  0x32   :  { %155 = vmatprep.subr.mxu0 %v70_v41  ;;  %226 = vmatprep.subr.mxu1 %v72_v42  ;;  %v48_v1 = vld [vmem:[%s684_s0] sm:$0xff]  ;;  %v344_v3 = vld [vmem:[#allocation4 + $0x1f8] sm:$0xff]  ;;  %v311_v6 = vld [vmem:[#allocation4 + $0xf0] sm:$0xff] }
  0x33   :  { %156 = vmatpush1.msra.mxu0 %v69_v43  ;;  %227 = vmatpush1.msra.mxu1 %v71_v44  ;;  %v296_v4 = vld [vmem:[#allocation4 + $0x78] sm:$0xff]  ;;  %v343_v7 = vld [vmem:[#allocation4 + $0x1f0] sm:$0xff]  ;;  %v310_v10 = vld [vmem:[#allocation4 + $0xe8] sm:$0xff] }
  0x34   :  { %157 = vmatprep.subr.mxu0 %v66_v45  ;;  %228 = vmatprep.subr.mxu1 %v68_v46  ;;  %v328_v5 = vld [vmem:[#allocation4 + $0x178] sm:$0xff]  ;;  %v295_v8 = vld [vmem:[#allocation4 + $0x70] sm:$0xff]  ;;  %v342_v11 = vld [vmem:[#allocation4 + $0x1e8] sm:$0xff] }
  0x35   :  { %158 = vmatpush1.msra.mxu0 %v65_v47  ;;  %229 = vmatpush1.msra.mxu1 %v67_v48  ;;  %v327_v9 = vld [vmem:[#allocation4 + $0x170] sm:$0xff]  ;;  %v294_v12 = vld [vmem:[#allocation4 + $0x68] sm:$0xff]  ;;  %v309_v14 = vld [vmem:[#allocation4 + $0xe0] sm:$0xff] }
  0x36   :  { %159 = vmatprep.subr.mxu0 %v62_v49  ;;  %230 = vmatprep.subr.mxu1 %v64_v50  ;;  %v326_v13 = vld [vmem:[#allocation4 + $0x168] sm:$0xff]  ;;  %v341_v15 = vld [vmem:[#allocation4 + $0x1e0] sm:$0xff]  ;;  %v308_v18 = vld [vmem:[#allocation4 + $0xd8] sm:$0xff] }
  0x37   :  { %160 = vmatpush1.msra.mxu0 %v61_v51  ;;  %231 = vmatpush1.msra.mxu1 %v63_v52  ;;  %v293_v16 = vld [vmem:[#allocation4 + $0x60] sm:$0xff]  ;;  %v340_v19 = vld [vmem:[#allocation4 + $0x1d8] sm:$0xff]  ;;  %v307_v22 = vld [vmem:[#allocation4 + $0xd0] sm:$0xff] }
  0x38   :  { %161 = vmatprep.subr.mxu0 %v58_v53  ;;  %232 = vmatprep.subr.mxu1 %v60_v54  ;;  %v325_v17 = vld [vmem:[#allocation4 + $0x160] sm:$0xff]  ;;  %v292_v20 = vld [vmem:[#allocation4 + $0x58] sm:$0xff]  ;;  %v339_v23 = vld [vmem:[#allocation4 + $0x1d0] sm:$0xff] }
  0x39   :  { %162 = vmatpush1.msra.mxu0 %v57_v55  ;;  %233 = vmatpush1.msra.mxu1 %v59_v56  ;;  %v324_v21 = vld [vmem:[#allocation4 + $0x158] sm:$0xff]  ;;  %v291_v24 = vld [vmem:[#allocation4 + $0x50] sm:$0xff]  ;;  %v306_v26 = vld [vmem:[#allocation4 + $0xc8] sm:$0xff] }
  0x3a   :  { %163 = vmatprep.subr.mxu0 %v54_v57  ;;  %234 = vmatprep.subr.mxu1 %v56_v58  ;;  %v323_v25 = vld [vmem:[#allocation4 + $0x150] sm:$0xff]  ;;  %v338_v27 = vld [vmem:[#allocation4 + $0x1c8] sm:$0xff]  ;;  %v305_v30 = vld [vmem:[#allocation4 + $0xc0] sm:$0xff] }
  0x3b   :  { %164 = vmatpush1.msra.mxu0 %v53_v59  ;;  %235 = vmatpush1.msra.mxu1 %v55_v60  ;;  %v290_v28 = vld [vmem:[#allocation4 + $0x48] sm:$0xff]  ;;  %v337_v31 = vld [vmem:[#allocation4 + $0x1c0] sm:$0xff]  ;;  %v304_v34 = vld [vmem:[#allocation4 + $0xb8] sm:$0xff] }
  0x3c   :  { %165 = vmatprep.subr.mxu0 %v50_v61  ;;  %236 = vmatprep.subr.mxu1 %v52_v62  ;;  %v322_v29 = vld [vmem:[#allocation4 + $0x148] sm:$0xff]  ;;  %v289_v32 = vld [vmem:[#allocation4 + $0x40] sm:$0xff]  ;;  %v336_v35 = vld [vmem:[#allocation4 + $0x1b8] sm:$0xff] }
  0x3d   :  { %166 = vmatpush1.msra.mxu0 %v49_v63  ;;  %237 = vmatpush1.msra.mxu1 %v51_v0  ;;  %v321_v33 = vld [vmem:[#allocation4 + $0x140] sm:$0xff]  ;;  %v288_v36 = vld [vmem:[#allocation4 + $0x38] sm:$0xff]  ;;  %v303_v38 = vld [vmem:[#allocation4 + $0xb0] sm:$0xff] }
  0x3e   :  { %200 = vmatmul.mubr.f32.vlgmr.msra.gmra.mxu0 %v48_v1  ;;  %271 = vmatmul.mubr.f32.vlgmr.msra.gmra.mxu1 %v48_v1  ;;  %v320_v37 = vld [vmem:[#allocation4 + $0x138] sm:$0xff]  ;;  %v335_v39 = vld [vmem:[#allocation4 + $0x1b0] sm:$0xff]  ;;  %v302_v42 = vld [vmem:[#allocation4 + $0xa8] sm:$0xff] }
  0x3f   :  { %500 = vmatprep.subr.mxu0 %v312_v2  ;;  %535 = vmatprep.subr.mxu1 %v344_v3  ;;  %v287_v40 = vld [vmem:[#allocation4 + $0x30] sm:$0xff]  ;;  %v334_v43 = vld [vmem:[#allocation4 + $0x1a8] sm:$0xff]  ;;  %v301_v46 = vld [vmem:[#allocation4 + $0xa0] sm:$0xff]  ;;  %v115_v2 = vlaneseq }
  0x40   :  { %501 = vmatpush3.msra.mxu0 %v296_v4  ;;  %536 = vmatpush3.msra.mxu1 %v328_v5  ;;  %v319_v41 = vld [vmem:[#allocation4 + $0x130] sm:$0xff]  ;;  %v286_v44 = vld [vmem:[#allocation4 + $0x28] sm:$0xff]  ;;  %v333_v47 = vld [vmem:[#allocation4 + $0x1a0] sm:$0xff] }
  0x41   :  { %502 = vmatprep.subr.mxu0 %v311_v6  ;;  %537 = vmatprep.subr.mxu1 %v343_v7  ;;  %v318_v45 = vld [vmem:[#allocation4 + $0x128] sm:$0xff]  ;;  %v285_v48 = vld [vmem:[#allocation4 + $0x20] sm:$0xff]  ;;  %v300_v50 = vld [vmem:[#allocation4 + $0x98] sm:$0xff]  ;;  %v116_v3 = vshrl.u32 %v115_v2, 7 }
  0x42   :  { %503 = vmatpush3.msra.mxu0 %v295_v8  ;;  %538 = vmatpush3.msra.mxu1 %v327_v9  ;;  %v317_v49 = vld [vmem:[#allocation4 + $0x120] sm:$0xff]  ;;  %v332_v51 = vld [vmem:[#allocation4 + $0x198] sm:$0xff]  ;;  %v299_v54 = vld [vmem:[#allocation4 + $0x90] sm:$0xff] }
  0x43   :  { %504 = vmatprep.subr.mxu0 %v310_v10  ;;  %539 = vmatprep.subr.mxu1 %v342_v11  ;;  %v284_v52 = vld [vmem:[#allocation4 + $0x18] sm:$0xff]  ;;  %v331_v55 = vld [vmem:[#allocation4 + $0x190] sm:$0xff]  ;;  %v298_v58 = vld [vmem:[#allocation4 + $0x88] sm:$0xff]  ;;  %v117_v4 = vsub.s32 0, %v116_v3  ;;  %v125_v5 = vsub.s32 2, %v116_v3  ;;  %v121_v7 = vsub.s32 1, %v116_v3 }
  0x44   :  { %505 = vmatpush3.msra.mxu0 %v294_v12  ;;  %540 = vmatpush3.msra.mxu1 %v326_v13  ;;  %v316_v53 = vld [vmem:[#allocation4 + $0x118] sm:$0xff]  ;;  %v283_v56 = vld [vmem:[#allocation4 + $0x10] sm:$0xff]  ;;  %v330_v59 = vld [vmem:[#allocation4 + $0x188] sm:$0xff]  ;;  %v129_v8 = vsub.s32 3, %v116_v3 }
  0x45   :  { %506 = vmatprep.subr.mxu0 %v309_v14  ;;  %541 = vmatprep.subr.mxu1 %v341_v15  ;;  %v315_v57 = vld [vmem:[#allocation4 + $0x110] sm:$0xff]  ;;  %v282_v60 = vld [vmem:[#allocation4 + $0x8] sm:$0xff]  ;;  %v297_v62 = vld [vmem:[#allocation4 + $0x80] sm:$0xff] }
  0x46   :  { %507 = vmatpush3.msra.mxu0 %v293_v16  ;;  %542 = vmatpush3.msra.mxu1 %v325_v17  ;;  %v314_v61 = vld [vmem:[#allocation4 + $0x108] sm:$0xff]  ;;  %v329_v63 = vld [vmem:[#allocation4 + $0x180] sm:$0xff] }
  0x47   :  { %508 = vmatprep.subr.mxu0 %v308_v18  ;;  %543 = vmatprep.subr.mxu1 %v340_v19  ;;  %v281_v0 = vld [vmem:[#allocation4] sm:$0xff] }
  0x48   :  { %509 = vmatpush3.msra.mxu0 %v292_v20  ;;  %544 = vmatpush3.msra.mxu1 %v324_v21  ;;  %v313_v1 = vld [vmem:[#allocation4 + $0x100] sm:$0xff] }
  0x49   :  { %510 = vmatprep.subr.mxu0 %v307_v22  ;;  %545 = vmatprep.subr.mxu1 %v339_v23  ;;  %v113_v6 = vld [vmem:[%s686_s2] sm:$0xf] }
  0x4a   :  { %511 = vmatpush3.msra.mxu0 %v291_v24  ;;  %546 = vmatpush3.msra.mxu1 %v323_v25  ;;  %v118_v9 = vrot.slane %v113_v6, %v117_v4  ;;  %v126_v10 = vrot.slane %v113_v6, %v125_v5  ;;  %v122_v11 = vrot.slane %v113_v6, %v121_v7 }
  0x4b   :  { %512 = vmatprep.subr.mxu0 %v306_v26  ;;  %547 = vmatprep.subr.mxu1 %v338_v27  ;;  %v130_v12 = vrot.slane %v113_v6, %v129_v8  ;;  %v499_v27 = vld [vmem:[%s688_s4] ss:$0 sm:$0xff] }
  0x4c   :  { %513 = vmatpush3.msra.mxu0 %v290_v28  ;;  %548 = vmatpush3.msra.mxu1 %v322_v29 }
  0x4d   :  { %514 = vmatprep.subr.mxu0 %v305_v30  ;;  %549 = vmatprep.subr.mxu1 %v337_v31 }
  0x4e   :  { %515 = vmatpush3.msra.mxu0 %v289_v32  ;;  %550 = vmatpush3.msra.mxu1 %v321_v33 }
  0x4f   :  { %516 = vmatprep.subr.mxu0 %v304_v34  ;;  %551 = vmatprep.subr.mxu1 %v336_v35 }
  0x50   :  { %517 = vmatpush3.msra.mxu0 %v288_v36  ;;  %552 = vmatpush3.msra.mxu1 %v320_v37 }
  0x51   :  { %518 = vmatprep.subr.mxu0 %v303_v38  ;;  %553 = vmatprep.subr.mxu1 %v335_v39 }
  0x52   :  { %519 = vmatpush3.msra.mxu0 %v287_v40  ;;  %554 = vmatpush3.msra.mxu1 %v319_v41 }
  0x53   :  { %520 = vmatprep.subr.mxu0 %v302_v42  ;;  %555 = vmatprep.subr.mxu1 %v334_v43 }
  0x54   :  { %521 = vmatpush3.msra.mxu0 %v286_v44  ;;  %556 = vmatpush3.msra.mxu1 %v318_v45 }
  0x55   :  { %522 = vmatprep.subr.mxu0 %v301_v46  ;;  %557 = vmatprep.subr.mxu1 %v333_v47 }
  0x56   :  { %523 = vmatpush3.msra.mxu0 %v285_v48  ;;  %558 = vmatpush3.msra.mxu1 %v317_v49 }
  0x57   :  { %524 = vmatprep.subr.mxu0 %v300_v50  ;;  %559 = vmatprep.subr.mxu1 %v332_v51 }
  0x58   :  { %525 = vmatpush3.msra.mxu0 %v284_v52  ;;  %560 = vmatpush3.msra.mxu1 %v316_v53 }
  0x59   :  { %526 = vmatprep.subr.mxu0 %v299_v54  ;;  %561 = vmatprep.subr.mxu1 %v331_v55 }
  0x5a   :  { %527 = vmatpush3.msra.mxu0 %v283_v56  ;;  %562 = vmatpush3.msra.mxu1 %v315_v57 }
  0x5b   :  { %528 = vmatprep.subr.mxu0 %v298_v58  ;;  %563 = vmatprep.subr.mxu1 %v330_v59 }
  0x5c   :  { %529 = vmatpush3.msra.mxu0 %v282_v60  ;;  %564 = vmatpush3.msra.mxu1 %v314_v61 }
  0x5d   :  { %530 = vmatprep.subr.mxu0 %v297_v62  ;;  %565 = vmatprep.subr.mxu1 %v329_v63 }
  0x5e   :  { %531 = vmatpush3.msra.mxu0 %v281_v0  ;;  %566 = vmatpush3.msra.mxu1 %v313_v1 }
  0xfe   :  { %v201_v13 = vpop.f32.mrf.mxu0  ;;  %v272_v14 = vpop.f32.mrf.mxu1 }
  0xff   :  { %v202_v15 = vadd.f32 %v201_v13, %v118_v9  ;;  %v273_v16 = vadd.f32 %v272_v14, %v126_v10 }
 0x100   :  { %v203_v17 = vpop.f32.mrf.mxu0  ;;  %v274_v18 = vpop.f32.mrf.mxu1 }
 0x101   :  { %577 = vtanh.f32 %v202_v15  ;;  %v204_v19 = vadd.f32 %v203_v17, %v122_v11  ;;  %v275_v20 = vadd.f32 %v274_v18, %v130_v12 }
 0x102   :  { %579 = vtanh.f32 %v273_v16 }
 0x103   :  { %581 = vtanh.f32 %v204_v19 }
 0x104   :  { %583 = vtanh.f32 %v275_v20 }
 0x10e   :  { %v578_v21 = vpop.eup %577 }
 0x10f   :  { %v580_v22 = vpop.eup %579 }
 0x110   :  { %v582_v23 = vpop.eup %581 }
 0x111   :  { %v584_v24 = vpop.eup %583  ;;  %416 = vmatprep.mubr.f32.mxu0 %v582_v23 }
 0x112   :  { %486 = vmatprep.mubr.f32.mxu1 %v584_v24  ;;  %417 = vmatmul.mubr.f32.vlgmr.msra.gmra.mxu0 %v578_v21 }
 0x113   :  { %487 = vmatmul.mubr.f32.vlgmr.msra.gmra.mxu1 %v580_v22 }
 0x1d2   :  { %v532_v25 = vpop.f32.mrf.mxu0 }
 0x1d3   :  { %v567_v26 = vpop.f32.mrf.mxu1 }
 0x1d4   :  { %v533_v28 = vpop.f32.mrf.mxu0 }
 0x1d5   :  { %v534_v29 = vadd.f32 %v533_v28, %v532_v25  ;;  %v568_v30 = vpop.f32.mrf.mxu1 }
 0x1d6   :  { %v569_v32 = vadd.f32 %v568_v30, %v567_v26 }
 0x1d7   :  { %v419_v31 = vadd.f32 %v534_v29, %v499_v27 }
 0x1d9   :  { %v489_v33 = vadd.f32 %v569_v32, %v419_v31 }
 0x1db   :  { %492 = vst [vmem:[%s689_s5] sm:$0xff] %v489_v33 }
 0x1dc   :  { %497 = vsyncpa [#allocation3], 1 }
 0x1dd   :  { %498 = vsyncpa [#allocation5], 1 }

</bundles_post_ra>
